<compile_context>
chip_gen: v6e
topology: v6e:2x2x1
jax: 0.10.0
libtpu: 0.0.40
codegen_flags: <defaults>
</compile_context>

<pallas_src>
import math

import jax
import jax.numpy as jnp
from jax import lax
from jax.experimental import pallas as pl
from jax.experimental.pallas import tpu as pltpu

HIDDEN = 128
NUM_HEADS = 4
HEAD_DIM = HIDDEN // NUM_HEADS  # 32


# --------------------------------------------------------------------------
# Kernel
# --------------------------------------------------------------------------
def _make_self_attention_kernel(with_probs):
    """Returns a kernel writing ctx (and optionally attention probs)."""

    def kernel(x_ref, wqkv_ref, bqkv_ref, ctx_ref, *maybe_probs_ref):
        probs_ref = maybe_probs_ref[0] if with_probs else None
        Bt, S, H = x_ref.shape          # block of Bt batch elements
        mxu_dtype = wqkv_ref.dtype      # bf16 (or f32) operands for the MXU
        exact = (mxu_dtype == jnp.float32)  # full-precision mode

        # ---- fused QKV projection: one (Bt*S, H) @ (H, 3H) MXU matmul ------
        x = x_ref[...].reshape(Bt * S, H).astype(mxu_dtype)
        qkv = jnp.dot(x, wqkv_ref[...], preferred_element_type=jnp.float32)
        qkv = qkv + bqkv_ref[...]                          # f32 bias add
        qkv = qkv.astype(mxu_dtype).reshape(Bt, S, 3 * H)

        # 128-lane-aligned slices. The 1/sqrt(head_dim) score scale is already
        # folded into the query weight/bias in the wrapper.
        q = qkv[..., 0 * H:1 * H]
        k = qkv[..., 1 * H:2 * H]
        v = qkv[..., 2 * H:3 * H]

        ctx_heads = []
        for h in range(NUM_HEADS):      # static unroll over 4 heads
            lo, hi = h * HEAD_DIM, (h + 1) * HEAD_DIM
            qh = q[..., lo:hi]          # (Bt, S, dh)
            kh = k[..., lo:hi]
            vh = v[..., lo:hi]

            # (Bt,S,dh) x (Bt,S,dh) -> (Bt,S,S): contract the head dim
            # directly, batched over Bt, no explicit transpose of kh.
            scores = lax.dot_general(qh, kh, (((2,), (2,)), ((0,), (0,))),
                                     preferred_element_type=jnp.float32)

            # numerically-stable softmax along the key axis
            m = jnp.max(scores, axis=-1, keepdims=True)
            e = jnp.exp(scores - m)
            denom = jnp.sum(e, axis=-1, keepdims=True)
            if exact:
                probs = e / denom                             # exact softmax
            else:
                probs = e * pl.reciprocal(denom, approx=True)  # EUP vrcp slot

            # dropout(p=0.1) is identity in eval mode -> no-op.
            if probs_ref is not None:
                probs_ref[:, h] = probs.astype(probs_ref.dtype)

            # (Bt,S,S) x (Bt,S,dh) -> (Bt,S,dh), batched over Bt
            ctx_heads.append(
                lax.dot_general(probs.astype(mxu_dtype), vh,
                                (((2,), (1,)), ((0,), (0,))),
                                preferred_element_type=jnp.float32))

        # Single lane-dense (last dim = 128) store of the full context block.
        ctx_ref[...] = jnp.concatenate(ctx_heads, axis=-1).astype(ctx_ref.dtype)

    return kernel


# --------------------------------------------------------------------------
# Tiling / VMEM-budget helpers
# --------------------------------------------------------------------------
def _tpu_vmem_capacity_bytes():
    """Physical VMEM per core (128 MiB v5e/v6e, 64 MiB v7x); safe fallback."""
    try:
        return int(pltpu.get_tpu_info().vmem_capacity_bytes)
    except Exception:
        return 64 * 1024 * 1024  # conservative fallback (= v7x per-TensorCore)


def _estimate_block_vmem_bytes(block_b, S, H, n_heads, with_probs,
                               probs_itemsize, mxu_itemsize):
    """Rough VMEM bytes for one grid step (double-buffered blocks + live f32
    intermediates of the unrolled head loop), used to size block_b."""
    rows = block_b * S
    x_blk = rows * H * 4                         # f32 input block
    ctx_blk = rows * H * 4                       # f32 context block
    probs_blk = (block_b * n_heads * S * S * probs_itemsize) if with_probs else 0
    pipelined = 2 * (x_blk + ctx_blk + probs_blk)              # double-buffered
    weights = 2 * (H * 3 * H * mxu_itemsize + 3 * H * 4)       # wqkv + bias
    interm = (rows * 3 * H * (4 + mxu_itemsize)   # qkv f32 result + cast copy
              + 3 * block_b * S * S * 4           # scores / exp tiles (unrolled)
              + rows * H * 4)                     # per-head ctx accumulation
    return pipelined + weights + interm


def _pick_block_b(B, S, H, n_heads, with_probs, probs_itemsize, mxu_itemsize,
                  vmem_budget_bytes):
    """Largest batch-divisor block that fits the VMEM budget.

    Capped at B//2 so the grid stays >= 2: the 'parallel' axis can then be
    sharded across both TensorCores on v7x / megacore parts. On single-TC
    chips this costs one extra ~0.35us grid step, which is negligible.
    """
    max_block = max(1, B // 2) if B >= 2 else 1
    best = 1
    for d in range(1, max_block + 1):
        if B % d:
            continue
        est = _estimate_block_vmem_bytes(d, S, H, n_heads, with_probs,
                                         probs_itemsize, mxu_itemsize)
        if est <= vmem_budget_bytes:
            best = d
    return best


# --------------------------------------------------------------------------
# Wrapper
# --------------------------------------------------------------------------
def bert_self_attention(hidden_states, wq, bq, wk, bk, wv, bv,
                        mxu_dtype=jnp.bfloat16,
                        probs_dtype=jnp.bfloat16,
                        output_attentions=True):
    """hidden_states: (B, S, H) f32.

    Returns (context (B,S,H) f32, probs (B,nH,S,S) probs_dtype) when
    output_attentions else (context,).
    """
    B, S, H = hidden_states.shape
    assert H == HIDDEN

    scale = 1.0 / math.sqrt(HEAD_DIM)
    # Fuse Q/K/V into a single (H, 3H) weight / (1, 3H) bias, folding the
    # 1/sqrt(head_dim) score scale into the query projection.
    wqkv = jnp.concatenate([wq * scale, wk, wv], axis=1).astype(mxu_dtype)
    bqkv = jnp.concatenate([bq * scale, bk, bv]).reshape(1, 3 * H).astype(jnp.float32)

    probs_itemsize = jnp.dtype(probs_dtype).itemsize
    mxu_itemsize = jnp.dtype(mxu_dtype).itemsize

    vmem_cap = _tpu_vmem_capacity_bytes()
    vmem_budget = int(vmem_cap * 0.40)            # pipeline blocks + intermediates
    block_b = _pick_block_b(B, S, H, NUM_HEADS, output_attentions,
                            probs_itemsize, mxu_itemsize, vmem_budget)
    est_bytes = _estimate_block_vmem_bytes(block_b, S, H, NUM_HEADS,
                                           output_attentions,
                                           probs_itemsize, mxu_itemsize)
    # Explicit scoped-VMEM limit with headroom (defaults are 16/32 MiB).
    vmem_limit = min(int(vmem_cap * 0.75),
                     max(32 * 1024 * 1024, est_bytes + (8 << 20)))

    grid = (B // block_b,)

    ctx_struct = jax.ShapeDtypeStruct((B, S, H), jnp.float32)
    ctx_spec = pl.BlockSpec((block_b, S, H), lambda i: (i, 0, 0))
    if output_attentions:
        out_shapes = (ctx_struct,
                      jax.ShapeDtypeStruct((B, NUM_HEADS, S, S), probs_dtype))
        out_specs = [ctx_spec,
                     pl.BlockSpec((block_b, NUM_HEADS, S, S),
                                  lambda i: (i, 0, 0, 0))]
    else:
        out_shapes = (ctx_struct,)
        out_specs = [ctx_spec]

    grid_spec = pltpu.PrefetchScalarGridSpec(
        num_scalar_prefetch=0,
        grid=grid,
        in_specs=[
            pl.BlockSpec((block_b, S, H), lambda i: (i, 0, 0)),
            pl.BlockSpec((H, 3 * H), lambda i: (0, 0)),
            pl.BlockSpec((1, 3 * H), lambda i: (0, 0)),
        ],
        out_specs=out_specs,
    )

    out = pl.pallas_call(
        _make_self_attention_kernel(output_attentions),
        out_shape=out_shapes,
        grid_spec=grid_spec,
        compiler_params=pltpu.CompilerParams(
            dimension_semantics=("parallel",),
            vmem_limit_bytes=int(vmem_limit)),
    )(hidden_states, wqkv, bqkv)

    if not isinstance(out, (tuple, list)):
        out = (out,)
    return tuple(out)


# --------------------------------------------------------------------------
# Pure-JAX reference (matches the PyTorch forward in eval mode)
# --------------------------------------------------------------------------
def _reference(hidden_states, wq, bq, wk, bk, wv, bv):
    B, S, H = hidden_states.shape
    q = hidden_states @ wq + bq
    k = hidden_states @ wk + bk
    v = hidden_states @ wv + bv

    def split(x):  # (B,S,H) -> (B,nH,S,dh)
        return x.reshape(B, S, NUM_HEADS, HEAD_DIM).transpose(0, 2, 1, 3)

    qh, kh, vh = split(q), split(k), split(v)
    scores = jnp.einsum("bhqd,bhkd->bhqk", qh, kh) / math.sqrt(HEAD_DIM)
    probs = jax.nn.softmax(scores, axis=-1)
    ctx = jnp.einsum("bhqk,bhkd->bhqd", probs, vh)
    ctx = ctx.transpose(0, 2, 1, 3).reshape(B, S, H)
    return ctx, probs


if __name__ == "__main__":
    B, S, H = 2, 8, HIDDEN
    key = jax.random.PRNGKey(0)
    kx, kq, kbq, kk, kbk, kv, kbv = jax.random.split(key, 7)

    # Deterministic parameter init (roughly nn.Linear default scale).
    bound = 1.0 / math.sqrt(H)
    x = jax.random.normal(kx, (B, S, H), dtype=jnp.float32)
    wq = jax.random.uniform(kq, (H, H), jnp.float32, -bound, bound)
    bq = jax.random.uniform(kbq, (H,), jnp.float32, -bound, bound)
    wk = jax.random.uniform(kk, (H, H), jnp.float32, -bound, bound)
    bk = jax.random.uniform(kbk, (H,), jnp.float32, -bound, bound)
    wv = jax.random.uniform(kv, (H, H), jnp.float32, -bound, bound)
    bv = jax.random.uniform(kbv, (H,), jnp.float32, -bound, bound)

    ctx_gold, probs_gold = _reference(x, wq, bq, wk, bk, wv, bv)

    # Perf mode: bf16 MXU operands, bf16 probs writeback (half the probs HBM
    # traffic), f32 accumulation. Recommended default.
    ctx_bf16, probs_bf16 = bert_self_attention(x, wq, bq, wk, bk, wv, bv)
    jax.block_until_ready((ctx_bf16, probs_bf16))
    assert ctx_bf16.shape == (B, S, H) and ctx_bf16.dtype == jnp.float32
    assert probs_bf16.shape == (B, NUM_HEADS, S, S)
    assert probs_bf16.dtype == jnp.bfloat16
    assert jnp.allclose(ctx_bf16, ctx_gold, atol=2e-2, rtol=2e-2)
    assert jnp.allclose(probs_bf16.astype(jnp.float32), probs_gold,
                        atol=2e-2, rtol=2e-2)

    # Full-precision mode: f32 MXU operands, f32 probs, exact softmax division
    # (parity with torch.softmax up to float rounding).
    ctx_f32, probs_f32 = bert_self_attention(x, wq, bq, wk, bk, wv, bv,
                                             mxu_dtype=jnp.float32,
                                             probs_dtype=jnp.float32)
    jax.block_until_ready((ctx_f32, probs_f32))
    assert jnp.allclose(ctx_f32, ctx_gold, atol=2e-3, rtol=2e-3)
    assert jnp.allclose(probs_f32, probs_gold, atol=2e-3, rtol=2e-3)

    # Context-only mode (output_attentions=False): probs HBM writeback skipped
    # entirely -> compute-bound everywhere.
    (ctx_only,) = bert_self_attention(x, wq, bq, wk, bk, wv, bv,
                                      output_attentions=False)
    jax.block_until_ready(ctx_only)
    assert jnp.allclose(ctx_only, ctx_gold, atol=2e-2, rtol=2e-2)

    print("KERNEL_OK")
</pallas_src>

<mosaic_0001>
module attributes {stable_mosaic.version = 11 : i64} {
  func.func @kernel(%arg0: i32, %arg1: memref<1x8x128xf32, #tpu.memory_space<vmem>>, %arg2: memref<128x384xbf16, #tpu.memory_space<vmem>>, %arg3: memref<1x384xf32, #tpu.memory_space<vmem>>, %arg4: memref<1x8x128xf32, #tpu.memory_space<vmem>>, %arg5: memref<1x4x8x8xbf16, #tpu.memory_space<vmem>>) attributes {dimension_semantics = [#tpu.dimension_semantics<parallel>], iteration_bounds = array<i64: 2>, scalar_prefetch = 0 : i64, scratch_operands = 0 : i64, tpu.core_type = #tpu.core_type<tc>, window_params = [{transform_indices = @transform_0, window_bounds = array<i64: 1, 8, 128>}, {pipeline_mode = #tpu.pipeline_mode<synchronous>, transform_indices = @transform_1, window_bounds = array<i64: 128, 384>}, {pipeline_mode = #tpu.pipeline_mode<synchronous>, transform_indices = @transform_2, window_bounds = array<i64: 1, 384>}, {transform_indices = @transform_3, window_bounds = array<i64: 1, 8, 128>}, {transform_indices = @transform_4, window_bounds = array<i64: 1, 4, 8, 8>}]} {
    %c0 = arith.constant 0 : index
    %c0_0 = arith.constant 0 : index
    %c0_1 = arith.constant 0 : index
    %0 = vector.load %arg1[%c0, %c0_0, %c0_1] : memref<1x8x128xf32, #tpu.memory_space<vmem>>, vector<1x8x128xf32>
    %1 = vector.shape_cast %0 : vector<1x8x128xf32> to vector<8x128xf32>
    %2 = arith.truncf %1 : vector<8x128xf32> to vector<8x128xbf16>
    %c0_2 = arith.constant 0 : index
    %c0_3 = arith.constant 0 : index
    %3 = vector.load %arg2[%c0_2, %c0_3] : memref<128x384xbf16, #tpu.memory_space<vmem>>, vector<128x384xbf16>
    %cst = arith.constant dense<0.000000e+00> : vector<8x384xf32>
    %4 = tpu.matmul %2, %3, %cst {dimension_numbers = #tpu.dot_dimension_numbers<[1], [0], [0], [1], [0, 0, 1, 1], [], []>} : vector<8x128xbf16>, vector<128x384xbf16>, vector<8x384xf32> -> vector<8x384xf32>
    %c0_4 = arith.constant 0 : index
    %c0_5 = arith.constant 0 : index
    %5 = vector.load %arg3[%c0_4, %c0_5] : memref<1x384xf32, #tpu.memory_space<vmem>>, vector<1x384xf32>
    %6 = vector.broadcast %5 : vector<1x384xf32> to vector<8x384xf32>
    %7 = arith.addf %4, %6 : vector<8x384xf32>
    %8 = arith.truncf %7 : vector<8x384xf32> to vector<8x384xbf16>
    %9 = vector.shape_cast %8 : vector<8x384xbf16> to vector<1x8x384xbf16>
    %10 = vector.extract_strided_slice %9 {offsets = [0, 0, 0], sizes = [1, 8, 128], strides = [1, 1, 1]} : vector<1x8x384xbf16> to vector<1x8x128xbf16>
    %11 = vector.extract_strided_slice %9 {offsets = [0, 0, 128], sizes = [1, 8, 128], strides = [1, 1, 1]} : vector<1x8x384xbf16> to vector<1x8x128xbf16>
    %12 = vector.extract_strided_slice %9 {offsets = [0, 0, 256], sizes = [1, 8, 128], strides = [1, 1, 1]} : vector<1x8x384xbf16> to vector<1x8x128xbf16>
    %13 = vector.extract_strided_slice %10 {offsets = [0, 0, 0], sizes = [1, 8, 32], strides = [1, 1, 1]} : vector<1x8x128xbf16> to vector<1x8x32xbf16>
    %14 = vector.extract_strided_slice %11 {offsets = [0, 0, 0], sizes = [1, 8, 32], strides = [1, 1, 1]} : vector<1x8x128xbf16> to vector<1x8x32xbf16>
    %15 = vector.extract_strided_slice %12 {offsets = [0, 0, 0], sizes = [1, 8, 32], strides = [1, 1, 1]} : vector<1x8x128xbf16> to vector<1x8x32xbf16>
    %cst_6 = arith.constant dense<0.000000e+00> : vector<1x8x8xf32>
    %16 = tpu.matmul %13, %14, %cst_6 {dimension_numbers = #tpu.dot_dimension_numbers<[2], [2], [1], [1], [0, 0, 0, 1, 1, 1], [0], [0]>} : vector<1x8x32xbf16>, vector<1x8x32xbf16>, vector<1x8x8xf32> -> vector<1x8x8xf32>
    %cst_7 = arith.constant dense<0xFF800000> : vector<1x8xf32>
    %17 = vector.multi_reduction <maximumf>, %16, %cst_7 [2] : vector<1x8x8xf32> to vector<1x8xf32>
    %18 = vector.shape_cast %17 : vector<1x8xf32> to vector<1x8x1xf32>
    %19 = vector.broadcast %18 : vector<1x8x1xf32> to vector<1x8x8xf32>
    %20 = arith.subf %16, %19 : vector<1x8x8xf32>
    %21 = math.exp %20 : vector<1x8x8xf32>
    %cst_8 = arith.constant dense<0.000000e+00> : vector<1x8xf32>
    %22 = vector.multi_reduction <add>, %21, %cst_8 [2] : vector<1x8x8xf32> to vector<1x8xf32>
    %23 = vector.shape_cast %22 : vector<1x8xf32> to vector<1x8x1xf32>
    %24 = tpu.reciprocal %23 {approx = true} : vector<1x8x1xf32> -> vector<1x8x1xf32>
    %25 = vector.broadcast %24 : vector<1x8x1xf32> to vector<1x8x8xf32>
    %26 = arith.mulf %21, %25 : vector<1x8x8xf32>
    %27 = arith.truncf %26 : vector<1x8x8xf32> to vector<1x8x8xbf16>
    %c0_9 = arith.constant 0 : index
    %c0_10 = arith.constant 0 : index
    %c0_11 = arith.constant 0 : index
    %c0_12 = arith.constant 0 : index
    %28 = vector.load %arg5[%c0_9, %c0_10, %c0_11, %c0_12] : memref<1x4x8x8xbf16, #tpu.memory_space<vmem>>, vector<1x1x8x8xbf16>
    %29 = vector.shape_cast %28 : vector<1x1x8x8xbf16> to vector<1x8x8xbf16>
    %30 = vector.shape_cast %27 : vector<1x8x8xbf16> to vector<1x1x8x8xbf16>
    tpu.vector_store %arg5[%c0_9, %c0_10, %c0_11, %c0_12], %30 {strides = array<i32>} : memref<1x4x8x8xbf16, #tpu.memory_space<vmem>>, vector<1x1x8x8xbf16>,
    %31 = arith.truncf %26 : vector<1x8x8xf32> to vector<1x8x8xbf16>
    %cst_13 = arith.constant dense<0.000000e+00> : vector<1x8x32xf32>
    %32 = tpu.matmul %31, %15, %cst_13 {dimension_numbers = #tpu.dot_dimension_numbers<[2], [1], [1], [2], [0, 0, 0, 1, 1, 2], [0], [0]>} : vector<1x8x8xbf16>, vector<1x8x32xbf16>, vector<1x8x32xf32> -> vector<1x8x32xf32>
    %33 = vector.extract_strided_slice %10 {offsets = [0, 0, 32], sizes = [1, 8, 32], strides = [1, 1, 1]} : vector<1x8x128xbf16> to vector<1x8x32xbf16>
    %34 = vector.extract_strided_slice %11 {offsets = [0, 0, 32], sizes = [1, 8, 32], strides = [1, 1, 1]} : vector<1x8x128xbf16> to vector<1x8x32xbf16>
    %35 = vector.extract_strided_slice %12 {offsets = [0, 0, 32], sizes = [1, 8, 32], strides = [1, 1, 1]} : vector<1x8x128xbf16> to vector<1x8x32xbf16>
    %cst_14 = arith.constant dense<0.000000e+00> : vector<1x8x8xf32>
    %36 = tpu.matmul %33, %34, %cst_14 {dimension_numbers = #tpu.dot_dimension_numbers<[2], [2], [1], [1], [0, 0, 0, 1, 1, 1], [0], [0]>} : vector<1x8x32xbf16>, vector<1x8x32xbf16>, vector<1x8x8xf32> -> vector<1x8x8xf32>
    %cst_15 = arith.constant dense<0xFF800000> : vector<1x8xf32>
    %37 = vector.multi_reduction <maximumf>, %36, %cst_15 [2] : vector<1x8x8xf32> to vector<1x8xf32>
    %38 = vector.shape_cast %37 : vector<1x8xf32> to vector<1x8x1xf32>
    %39 = vector.broadcast %38 : vector<1x8x1xf32> to vector<1x8x8xf32>
    %40 = arith.subf %36, %39 : vector<1x8x8xf32>
    %41 = math.exp %40 : vector<1x8x8xf32>
    %cst_16 = arith.constant dense<0.000000e+00> : vector<1x8xf32>
    %42 = vector.multi_reduction <add>, %41, %cst_16 [2] : vector<1x8x8xf32> to vector<1x8xf32>
    %43 = vector.shape_cast %42 : vector<1x8xf32> to vector<1x8x1xf32>
    %44 = tpu.reciprocal %43 {approx = true} : vector<1x8x1xf32> -> vector<1x8x1xf32>
    %45 = vector.broadcast %44 : vector<1x8x1xf32> to vector<1x8x8xf32>
    %46 = arith.mulf %41, %45 : vector<1x8x8xf32>
    %47 = arith.truncf %46 : vector<1x8x8xf32> to vector<1x8x8xbf16>
    %c0_17 = arith.constant 0 : index
    %c1 = arith.constant 1 : index
    %c0_18 = arith.constant 0 : index
    %c0_19 = arith.constant 0 : index
    %48 = vector.load %arg5[%c0_17, %c1, %c0_18, %c0_19] : memref<1x4x8x8xbf16, #tpu.memory_space<vmem>>, vector<1x1x8x8xbf16>
    %49 = vector.shape_cast %48 : vector<1x1x8x8xbf16> to vector<1x8x8xbf16>
    %50 = vector.shape_cast %47 : vector<1x8x8xbf16> to vector<1x1x8x8xbf16>
    tpu.vector_store %arg5[%c0_17, %c1, %c0_18, %c0_19], %50 {strides = array<i32>} : memref<1x4x8x8xbf16, #tpu.memory_space<vmem>>, vector<1x1x8x8xbf16>,
    %51 = arith.truncf %46 : vector<1x8x8xf32> to vector<1x8x8xbf16>
    %cst_20 = arith.constant dense<0.000000e+00> : vector<1x8x32xf32>
    %52 = tpu.matmul %51, %35, %cst_20 {dimension_numbers = #tpu.dot_dimension_numbers<[2], [1], [1], [2], [0, 0, 0, 1, 1, 2], [0], [0]>} : vector<1x8x8xbf16>, vector<1x8x32xbf16>, vector<1x8x32xf32> -> vector<1x8x32xf32>
    %53 = vector.extract_strided_slice %10 {offsets = [0, 0, 64], sizes = [1, 8, 32], strides = [1, 1, 1]} : vector<1x8x128xbf16> to vector<1x8x32xbf16>
    %54 = vector.extract_strided_slice %11 {offsets = [0, 0, 64], sizes = [1, 8, 32], strides = [1, 1, 1]} : vector<1x8x128xbf16> to vector<1x8x32xbf16>
    %55 = vector.extract_strided_slice %12 {offsets = [0, 0, 64], sizes = [1, 8, 32], strides = [1, 1, 1]} : vector<1x8x128xbf16> to vector<1x8x32xbf16>
    %cst_21 = arith.constant dense<0.000000e+00> : vector<1x8x8xf32>
    %56 = tpu.matmul %53, %54, %cst_21 {dimension_numbers = #tpu.dot_dimension_numbers<[2], [2], [1], [1], [0, 0, 0, 1, 1, 1], [0], [0]>} : vector<1x8x32xbf16>, vector<1x8x32xbf16>, vector<1x8x8xf32> -> vector<1x8x8xf32>
    %cst_22 = arith.constant dense<0xFF800000> : vector<1x8xf32>
    %57 = vector.multi_reduction <maximumf>, %56, %cst_22 [2] : vector<1x8x8xf32> to vector<1x8xf32>
    %58 = vector.shape_cast %57 : vector<1x8xf32> to vector<1x8x1xf32>
    %59 = vector.broadcast %58 : vector<1x8x1xf32> to vector<1x8x8xf32>
    %60 = arith.subf %56, %59 : vector<1x8x8xf32>
    %61 = math.exp %60 : vector<1x8x8xf32>
    %cst_23 = arith.constant dense<0.000000e+00> : vector<1x8xf32>
    %62 = vector.multi_reduction <add>, %61, %cst_23 [2] : vector<1x8x8xf32> to vector<1x8xf32>
    %63 = vector.shape_cast %62 : vector<1x8xf32> to vector<1x8x1xf32>
    %64 = tpu.reciprocal %63 {approx = true} : vector<1x8x1xf32> -> vector<1x8x1xf32>
    %65 = vector.broadcast %64 : vector<1x8x1xf32> to vector<1x8x8xf32>
    %66 = arith.mulf %61, %65 : vector<1x8x8xf32>
    %67 = arith.truncf %66 : vector<1x8x8xf32> to vector<1x8x8xbf16>
    %c0_24 = arith.constant 0 : index
    %c2 = arith.constant 2 : index
    %c0_25 = arith.constant 0 : index
    %c0_26 = arith.constant 0 : index
    %68 = vector.load %arg5[%c0_24, %c2, %c0_25, %c0_26] : memref<1x4x8x8xbf16, #tpu.memory_space<vmem>>, vector<1x1x8x8xbf16>
    %69 = vector.shape_cast %68 : vector<1x1x8x8xbf16> to vector<1x8x8xbf16>
    %70 = vector.shape_cast %67 : vector<1x8x8xbf16> to vector<1x1x8x8xbf16>
    tpu.vector_store %arg5[%c0_24, %c2, %c0_25, %c0_26], %70 {strides = array<i32>} : memref<1x4x8x8xbf16, #tpu.memory_space<vmem>>, vector<1x1x8x8xbf16>,
    %71 = arith.truncf %66 : vector<1x8x8xf32> to vector<1x8x8xbf16>
    %cst_27 = arith.constant dense<0.000000e+00> : vector<1x8x32xf32>
    %72 = tpu.matmul %71, %55, %cst_27 {dimension_numbers = #tpu.dot_dimension_numbers<[2], [1], [1], [2], [0, 0, 0, 1, 1, 2], [0], [0]>} : vector<1x8x8xbf16>, vector<1x8x32xbf16>, vector<1x8x32xf32> -> vector<1x8x32xf32>
    %73 = vector.extract_strided_slice %10 {offsets = [0, 0, 96], sizes = [1, 8, 32], strides = [1, 1, 1]} : vector<1x8x128xbf16> to vector<1x8x32xbf16>
    %74 = vector.extract_strided_slice %11 {offsets = [0, 0, 96], sizes = [1, 8, 32], strides = [1, 1, 1]} : vector<1x8x128xbf16> to vector<1x8x32xbf16>
    %75 = vector.extract_strided_slice %12 {offsets = [0, 0, 96], sizes = [1, 8, 32], strides = [1, 1, 1]} : vector<1x8x128xbf16> to vector<1x8x32xbf16>
    %cst_28 = arith.constant dense<0.000000e+00> : vector<1x8x8xf32>
    %76 = tpu.matmul %73, %74, %cst_28 {dimension_numbers = #tpu.dot_dimension_numbers<[2], [2], [1], [1], [0, 0, 0, 1, 1, 1], [0], [0]>} : vector<1x8x32xbf16>, vector<1x8x32xbf16>, vector<1x8x8xf32> -> vector<1x8x8xf32>
    %cst_29 = arith.constant dense<0xFF800000> : vector<1x8xf32>
    %77 = vector.multi_reduction <maximumf>, %76, %cst_29 [2] : vector<1x8x8xf32> to vector<1x8xf32>
    %78 = vector.shape_cast %77 : vector<1x8xf32> to vector<1x8x1xf32>
    %79 = vector.broadcast %78 : vector<1x8x1xf32> to vector<1x8x8xf32>
    %80 = arith.subf %76, %79 : vector<1x8x8xf32>
    %81 = math.exp %80 : vector<1x8x8xf32>
    %cst_30 = arith.constant dense<0.000000e+00> : vector<1x8xf32>
    %82 = vector.multi_reduction <add>, %81, %cst_30 [2] : vector<1x8x8xf32> to vector<1x8xf32>
    %83 = vector.shape_cast %82 : vector<1x8xf32> to vector<1x8x1xf32>
    %84 = tpu.reciprocal %83 {approx = true} : vector<1x8x1xf32> -> vector<1x8x1xf32>
    %85 = vector.broadcast %84 : vector<1x8x1xf32> to vector<1x8x8xf32>
    %86 = arith.mulf %81, %85 : vector<1x8x8xf32>
    %87 = arith.truncf %86 : vector<1x8x8xf32> to vector<1x8x8xbf16>
    %c0_31 = arith.constant 0 : index
    %c3 = arith.constant 3 : index
    %c0_32 = arith.constant 0 : index
    %c0_33 = arith.constant 0 : index
    %88 = vector.load %arg5[%c0_31, %c3, %c0_32, %c0_33] : memref<1x4x8x8xbf16, #tpu.memory_space<vmem>>, vector<1x1x8x8xbf16>
    %89 = vector.shape_cast %88 : vector<1x1x8x8xbf16> to vector<1x8x8xbf16>
    %90 = vector.shape_cast %87 : vector<1x8x8xbf16> to vector<1x1x8x8xbf16>
    tpu.vector_store %arg5[%c0_31, %c3, %c0_32, %c0_33], %90 {strides = array<i32>} : memref<1x4x8x8xbf16, #tpu.memory_space<vmem>>, vector<1x1x8x8xbf16>,
    %91 = arith.truncf %86 : vector<1x8x8xf32> to vector<1x8x8xbf16>
    %cst_34 = arith.constant dense<0.000000e+00> : vector<1x8x32xf32>
    %92 = tpu.matmul %91, %75, %cst_34 {dimension_numbers = #tpu.dot_dimension_numbers<[2], [1], [1], [2], [0, 0, 0, 1, 1, 2], [0], [0]>} : vector<1x8x8xbf16>, vector<1x8x32xbf16>, vector<1x8x32xf32> -> vector<1x8x32xf32>
    %93 = tpu.concatenate %32, %52, %72, %92 in 2 : vector<1x8x32xf32>, vector<1x8x32xf32>, vector<1x8x32xf32>, vector<1x8x32xf32> -> vector<1x8x128xf32>
    %c0_35 = arith.constant 0 : index
    %c0_36 = arith.constant 0 : index
    %c0_37 = arith.constant 0 : index
    %94 = vector.load %arg4[%c0_35, %c0_36, %c0_37] : memref<1x8x128xf32, #tpu.memory_space<vmem>>, vector<1x8x128xf32>
    tpu.vector_store %arg4[%c0_35, %c0_36, %c0_37], %93 {strides = array<i32>} : memref<1x8x128xf32, #tpu.memory_space<vmem>>, vector<1x8x128xf32>,
    return
  }
  func.func @transform_0(%arg0: i32) -> (i32, i32, i32) {
    %c0_i32 = arith.constant 0 : i32
    %c0_i32_0 = arith.constant 0 : i32
    %c0_i32_1 = arith.constant 0 : i32
    return %arg0, %c0_i32, %c0_i32_0 : i32, i32, i32
  }
  func.func @transform_1(%arg0: i32) -> (i32, i32) {
    %c0_i32 = arith.constant 0 : i32
    %c0_i32_0 = arith.constant 0 : i32
    %c0_i32_1 = arith.constant 0 : i32
    return %c0_i32, %c0_i32_0 : i32, i32
  }
  func.func @transform_2(%arg0: i32) -> (i32, i32) {
    %c0_i32 = arith.constant 0 : i32
    %c0_i32_0 = arith.constant 0 : i32
    %c0_i32_1 = arith.constant 0 : i32
    return %c0_i32, %c0_i32_0 : i32, i32
  }
  func.func @transform_3(%arg0: i32) -> (i32, i32, i32) {
    %c0_i32 = arith.constant 0 : i32
    %c0_i32_0 = arith.constant 0 : i32
    %c0_i32_1 = arith.constant 0 : i32
    return %arg0, %c0_i32, %c0_i32_0 : i32, i32, i32
  }
  func.func @transform_4(%arg0: i32) -> (i32, i32, i32, i32) {
    %c0_i32 = arith.constant 0 : i32
    %c0_i32_0 = arith.constant 0 : i32
    %c0_i32_1 = arith.constant 0 : i32
    %c0_i32_2 = arith.constant 0 : i32
    return %arg0, %c0_i32, %c0_i32_0, %c0_i32_1 : i32, i32, i32, i32
  }
}

</mosaic_0001>

<bundles_post_ra>
// kernel: tpu_custom_call.1
= control target key start
LH: loop header
LB: loop body
LE: loop exit
PB: predicated region body
PF: predicated region fallthrough
CT: control target
= control target key end

     0   :  { %10 = vsyncpa [#allocation3], 0  ;;  %s1870_s0 = inlined_call_operand.hbm [shape: f32[2,8,128], index: 0, kind: input, shape index: {}]   ;;  %s1871_s1 = inlined_call_operand.hbm [shape: bf16[128,384], index: 1, kind: input, shape index: {}]   ;;  %s1872_s2 = inlined_call_operand.vmem [shape: f32[1,384], index: 2, kind: input, shape index: {}]   ;;  %s1873_s3 = inlined_call_operand.hbm [shape: f32[2,8,128], index: 3, kind: output, shape index: {0}]   ;;  %s1874_s4 = inlined_call_operand.hbm [shape: bf16[2,4,8,8], index: 4, kind: output, shape index: {1}]  }
   0x1   :  { %12 = vsyncpa [#allocation3 + $0x1], 0 }
   0x2   :  { %13 = vsyncpa [#allocation6], 0 }
   0x3   :  { %14 = vsyncpa [#allocation4], 0 }
   0x4   :  { %16 = vsyncpa [#allocation4 + $0x1], 0 }
   0x5   :  { %17 = vsyncpa [#allocation9], 0 }
   0x6   :  { %19 = vsyncpa [#allocation9 + $0x1], 0  ;;  %s1574_s15 = smov 0   ;;  %s1576_s16 = smov 0  }
   0x7   :  { %s1578_s17 = smov 0   ;;  %s1580_s18 = smov 0  }
   0x8 LB: > { %s1595_s19 = sadd.s32 4294967295, %s1534_s18   ;;  %s1116_s20 = sadd.s32 4294967294, %s1534_s18   ;;  %s1534_s18 = sphi %s1580_s18, %s1896_s18   ;;  %s1530_s17 = sphi %s1578_s17, %s1895_s17   ;;  %s1526_s16 = sphi %s1576_s16, %s1894_s16   ;;  %s1522_s15 = sphi %s1574_s15, %s1893_s15  }
   0x9   : > { %p45_p0 = scmp.ne.s32.totalorder %s1526_s16, %s1522_s15  ;;  %p1875_p1 = scmp.eq.s32.totalorder %s1595_s19, 0 }
   0xa   : > { %p117_p3 = scmp.eq.s32.totalorder %s1116_s20, 1  ;;  %p1117_p5 = scmp.ge.s32.totalorder %s1534_s18, 1 }
   0xb   : > { %p1604_p4 = por %p1875_p1, %p45_p0  ;;  %p150_p7 = scmp.lt.s32.totalorder %s1534_s18, 3 }
   0xc   : > { %p1609_p6 = por %p117_p3, %p45_p0  ;;  %s1536_s24 = smov [#allocation5]  }
   0xd   : > { %s1879_s21 = scalar_select %p1604_p4, 1, 0 }
   0xe   : > { %s1880_s22 = scalar_select %p1609_p6, 1, 0 }
   0xf   : > { %p1614_p8 = pnand %p1117_p5, %p150_p7  ;;  %s162_s25 = sshll.u32 %s1536_s24, 4  ;;  %s163_s25 = int_to_ptr.vmem [resolvable:$true] %s162_s25 }
  0x10   : > { %s1628_s27 = sadd.s32 1, %s1534_s18   ;;  %s32_s28 = sadd.s32 1, %s1530_s17 }
  0x11   : > { %s1881_s23 = scalar_select %p1614_p8, 1, 0 }
  0x12   : > { %p1273_p9 = pneg %p1614_p8  ;;  %s29_s29 = ssub.s32 %s1534_s18, %s1628_s27 }
  0x13   : > { %s1393_s30 = scalar_lea.vmem %s163_s25, 3072  ;;  %p1401_p5 = scmp.lt.s32.totalorder %s163_s25, %s163_s25 }
  0x14   : > { %p1623_p11 = pnand %p1273_p9, %p1875_p1  ;;  %p1394_p13 = scmp.ne.s32.totalorder %s163_s25, %s1393_s30 }
  0x15   : > { %p1402_p7 = scmp.lt.s32.totalorder %s1393_s30, %s1393_s30 }
  0x16   : > { %p1384_p12 = pneg %p1623_p11 }
  0x17   : > { %p1403_p10 = por %p1402_p7, %p1401_p5 }
  0x18   : > { %p1396_p0 = pnand %p1394_p13, %p1384_p12 }
  0x1a   : > { %p1397_p3 = pneg %p1396_p0 }
  0x1c   : > { %p1404_p2 = pnand %p1403_p10, %p1397_p3 }
  0x1e   : > { %1407 = shalt.err (!%p1404_p2)
}
  0x1f   : > { %s1537_s5 = smov 192   ;;  %s1538_s6 = smov 12  }
  0x20   : > { %1276 = dma.hbm_to_vmem [thread:$0]  (!%p1623_p11), %s1871_s1, 3072, %s163_s25, [#allocation6], %s1537_s5, %s1537_s5, %s1538_s6  }
  0x21   : > { %p30_p9 = scmp.eq.s32.totalorder %s29_s29, 0  ;;  %p39_p12 = scmp.ne.s32.totalorder %s1530_s17, %s1526_s16 }
  0x22   : > { %p40_p10 = scmp.eq.s32.totalorder %s1534_s18, 0  ;;  %p1289_p2 = scmp.lt.s32.totalorder %s1534_s18, 2 }
  0x23   : > { %s1645_s9 = scalar_select %p30_p9, %s1530_s17, %s32_s28  }
  0x24   : > { %p41_p13 = por %p40_p10, %p39_p12  ;;  %p1883_p0 = scmp.eq.s32.totalorder %s1595_s19, 1 }
  0x25   : > { %s179_s11 = sand.u32 1, %s1530_s17   ;;  %s1121_s12 = sshll.u32 %s1534_s18, 7 }
  0x26   : > { %p1649_p3 = por %p1883_p0, %p39_p12  ;;  %s1120_s13 = sshll.u32 %s179_s11, 3 }
  0x27   : > { %s1658_s24 = scalar_lea.hbm %s1870_s0, %s1121_s12  ;;  %s183_s25 = scalar_lea.vmem [#allocation2], %s1120_s13 }
  0x28   : > { %s1884_s10 = scalar_select %p1649_p3, 1, 0 }
  0x29   : > { %s190_s26 = sshll.u32 %s183_s25, 4  ;;  %p1660_p11 = pnand %p1289_p2, %p41_p13  ;;  %s191_s26 = int_to_ptr.vmem [resolvable:$true] %s190_s26 }
  0x2a   : > { %s180_s29 = scalar_lea.sflag [#allocation3], %s179_s11  ;;  %s1408_s30 = scalar_lea.hbm %s1658_s24, 128 }
  0x2b   : > { %p1409_p5 = scmp.ne.s32.totalorder %s1658_s24, %s1408_s30  ;;  %p1410_p7 = pneg %p1660_p11 }
  0x2c   : > { %s1413_s7 = scalar_lea.hbm %s1870_s0, 256  ;;  %p1414_p10 = scmp.lt.s32.totalorder %s1658_s24, %s1870_s0 }
  0x2d   : > { %p1411_p9 = pnand %p1410_p7, %p1409_p5  ;;  %p1415_p2 = scmp.lt.s32.totalorder %s1413_s7, %s1408_s30 }
  0x2f   : > { %p1412_p12 = pneg %p1411_p9  ;;  %p1416_p13 = por %p1415_p2, %p1414_p10 }
  0x31   : > { %p1417_p0 = pnand %p1416_p13, %p1412_p12 }
  0x33   : > { %1420 = shalt.err (!%p1417_p0)
}
  0x34   : > { %s1421_s13 = scalar_lea.vmem %s191_s26, 128  ;;  %s1539_s11 = smov [#allocation2]  }
  0x35   : > { %p1422_p1 = scmp.ne.s32.totalorder %s191_s26, %s1421_s13  ;;  %s1426_s14 = sshll.u32 %s1539_s11, 4  ;;  %s1427_s14 = int_to_ptr.vmem [resolvable:$false] %s1426_s14 }
  0x36   : > { %s1428_s20 = scalar_lea.vmem %s1427_s14, 256  ;;  %p1429_p5 = scmp.lt.s32.totalorder %s191_s26, %s1427_s14 }
  0x37   : > { %p1424_p6 = pnand %p1422_p1, %p1410_p7  ;;  %p1430_p9 = scmp.lt.s32.totalorder %s1428_s20, %s1421_s13 }
  0x39   : > { %p1425_p3 = pneg %p1424_p6  ;;  %p1431_p4 = por %p1430_p9, %p1429_p5 }
  0x3b   : > { %p1432_p8 = pnand %p1431_p4, %p1425_p3 }
  0x3d   : > { %1435 = shalt.err (!%p1432_p8)
}
  0x3e   : > { %1280 = dma.hbm_to_vmem [thread:$0]  (!%p1660_p11), %s1658_s24, 128, %s191_s26, %s180_s29  }
  0x3f   : > { %p1886_p12 = scmp.ne.s32.totalorder %s1881_s23, 0 }
  0x40   : > { %s1681_s25 = sand.u32 (!%p1886_p12), 1, %s1526_s16   ;;  %p1887_p1 = scmp.ne.s32.totalorder (!%p1886_p12), %s1879_s21, 0 }
  0x41   : > { %199 = sbr.rel (%p1886_p12) target bundleno = 1284 (0x504), region = 32  ;;  %s1123_s30 = sshll.u32 (!%p1886_p12), %s1681_s25, 3 }
  0x42   : > { %s202_s5 = scalar_lea.sflag (!%p1886_p12), [#allocation3], %s1681_s25  ;;  %s1687_s6 = scalar_lea.vmem (!%p1886_p12), [#allocation2], %s1123_s30 }
  0x46   : > { %1505 = dma.done.wait (%p1887_p1), %s202_s5, 128  }
  0x47   : > { %1507 = vsyncadd (%p1887_p1), %s202_s5, 4294967168  ;;  %p1888_p4 = scmp.eq.s32.totalorder %s1595_s19, 0 }
  0x49   : > { %1509 = dma.done.wait (%p1888_p4), [#allocation6], 3072   ;;  %p1889_p6 = pmov %p1888_p4 }
  0x4a   : > { %v1540_v0 = vmov 0   ;;  %v1334_v1 = vld [vmem:[#allocation5 + $0xac] ss:$12 sps:$4 sm:$0xff]   ;;  %v1336_v2 = vld [vmem:[#allocation5 + $0xa8] ss:$12 sps:$4 sm:$0xff]   ;;  %v1541_v19 = vmov 0.0   ;;  %v276_v20 = vlaneseq }
  0x4b   : > { %1511 = vsyncadd (%p1889_p6), [#allocation6], 4294964224  ;;  %451 = vmatprep.mubr.bf16.mxu0 %v1540_v0  ;;  %419 = vmatprep.subr.bf16.mxu0 %v1334_v1  ;;  %v1337_v3 = vld [vmem:[#allocation5 + $0x94] ss:$12 sps:$4 sm:$0xff]   ;;  %v1339_v4 = vld [vmem:[#allocation5 + $0x90] ss:$12 sps:$4 sm:$0xff]  }
  0x4c   : > { %420 = vmatpush1.bf16.msra.mxu0 %v1336_v2  ;;  %v1340_v5 = vld [vmem:[#allocation5 + $0x7c] ss:$12 sps:$4 sm:$0xff]   ;;  %v1342_v6 = vld [vmem:[#allocation5 + $0x78] ss:$12 sps:$4 sm:$0xff]   ;;  %v1345_v8 = vld [vmem:[#allocation5 + $0x60] ss:$12 sps:$4 sm:$0xff]   ;;  %1195 = vmatprep.subr.bf16.mxu1 %v1541_v19 }
  0x4d   : > { %421 = vmatprep.subr.bf16.mxu0 %v1337_v3  ;;  %v1343_v7 = vld [vmem:[#allocation5 + $0x64] ss:$12 sps:$4 sm:$0xff]   ;;  %v1346_v9 = vld [vmem:[#allocation5 + $0x4c] ss:$12 sps:$4 sm:$0xff]   ;;  %v1348_v10 = vld [vmem:[#allocation5 + $0x48] ss:$12 sps:$4 sm:$0xff]  }
  0x4e   : > { %v1349_v11 = vld [vmem:[#allocation5 + $0x34] ss:$12 sps:$4 sm:$0xff]   ;;  %v1351_v12 = vld [vmem:[#allocation5 + $0x30] ss:$12 sps:$4 sm:$0xff]   ;;  %v1354_v14 = vld [vmem:[#allocation5 + $0x18] ss:$12 sps:$4 sm:$0xff]  }
  0x4f   : > { %v1352_v13 = vld [vmem:[#allocation5 + $0x1c] ss:$12 sps:$4 sm:$0xff]   ;;  %v1355_v15 = vld [vmem:[#allocation5 + $0x4] ss:$12 sps:$4 sm:$0xff]   ;;  %v1357_v16 = vld [vmem:[#allocation5] ss:$12 sps:$4 sm:$0xff]  }
  0x50   : > { %422 = vmatpush1.bf16.msra.mxu0 %v1339_v4  ;;  %v240_v17 = vld [vmem:[%s1687_s6] sm:$0xff]  ;;  %vm1542_vm0 = vmmov 0   ;;  %v1704_v21 = vshrl.u32 %v276_v20, 7  ;;  %vm503_vm1 = vcmask 261120   ;;  %s1543_s24 = smov 64   ;;  %s1544_s26 = smov 96  }
  0x51   : > { %423 = vmatprep.subr.bf16.mxu0 %v1340_v5  ;;  %v241_v18 = vpack.c.bf16 %v240_v17, %v240_v17  ;;  %1211 = vmatprep.mubr.msk.bf16.mxu1 %vm1542_vm0, %v1541_v19  ;;  %v1711_v24 = vld [vmem:[%s1872_s2] sm:$0x7]  ;;  %s1545_s28 = smov 32   ;;  %v1359_v37 = vld [vmem:[#allocation5 + $0x98] ss:$12 sps:$4 sm:$0xff]   ;;  %vm550_vm2 = vcmask 64512  }
  0x52   : > { %v282_v22 = vsub.s32 1, %v1704_v21  ;;  %v278_v23 = vsub.s32 0, %v1704_v21  ;;  %v1358_v36 = vld [vmem:[#allocation5 + $0xb0] ss:$12 sps:$4 sm:$0xff]   ;;  %v1360_v38 = vld [vmem:[#allocation5 + $0x80] ss:$12 sps:$4 sm:$0xff]  }
  0x53   : > { %1196 = vmatpush3.bf16.msra.mxu1 %v1358_v36  ;;  %v1361_v39 = vld [vmem:[#allocation5 + $0x68] ss:$12 sps:$4 sm:$0xff]   ;;  %v1362_v40 = vld [vmem:[#allocation5 + $0x50] ss:$12 sps:$4 sm:$0xff]   ;;  %v1363_v41 = vld [vmem:[#allocation5 + $0x38] ss:$12 sps:$4 sm:$0xff]  }
  0x54   : > { %424 = vmatpush1.bf16.msra.mxu0 %v1342_v6  ;;  %v283_v25 = vrot.slane %v1711_v24, %v282_v22  ;;  %v279_v27 = vrot.slane %v1711_v24, %v278_v23  ;;  %1197 = vmatprep.subr.bf16.mxu1 %v1541_v19  ;;  %v1364_v42 = vld [vmem:[#allocation5 + $0x20] ss:$12 sps:$4 sm:$0xff]   ;;  %v1365_v43 = vld [vmem:[#allocation5 + $0x8] ss:$12 sps:$4 sm:$0xff]   ;;  %v286_v58 = vsub.s32 2, %v1704_v21  ;;  %vm568_vm3 = vcmask 1043456  }
  0x55   : > { %425 = vmatprep.subr.bf16.mxu0 %v1343_v7  ;;  %s1126_s29 = sshll.u32 %s1681_s25, 4  ;;  %vm563_vm4 = vcmask 60416   ;;  %s1169_s8 = sshll.u32 %s1595_s19, 8 }
  0x56   : > { %v287_v59 = vrot.slane %v1711_v24, %v286_v58  ;;  %s1765_s7 = scalar_lea.vmem [#allocation8], %s1126_s29  ;;  %s1796_s14 = scalar_lea.hbm %s1874_s4, %s1169_s8 }
  0x57   : > { %1198 = vmatpush3.bf16.msra.mxu1 %v1359_v37  ;;  %s1001_s12 = sshll.u32 %s1765_s7, 4  ;;  %s975_s20 = scalar_lea.sflag [#allocation9], %s1681_s25  ;;  %s1798_s12 = int_to_ptr.vmem [resolvable:$true] %s1001_s12 }
  0x58   : > { %426 = vmatpush1.bf16.msra.mxu0 %v1345_v8  ;;  %1199 = vmatprep.subr.bf16.mxu1 %v1541_v19  ;;  %s1436_s5 = scalar_lea.vmem %s1798_s12, 256  ;;  %p1890_p3 = scmp.ne.s32.totalorder %s1884_s10, 0 }
  0x59   : > { %427 = vmatprep.subr.bf16.mxu0 %v1346_v9  ;;  %p1437_p8 = scmp.ne.s32.totalorder %s1798_s12, %s1436_s5  ;;  %s1546_s6 = smov [#allocation8]  }
  0x5a   : > { %s1440_s21 = sshll.u32 %s1546_s6, 4  ;;  %s1441_s21 = int_to_ptr.vmem [resolvable:$false] %s1440_s21 }
  0x5b   : > { %1200 = vmatpush3.bf16.msra.mxu1 %v1360_v38  ;;  %p1438_p11 = pnand %p1437_p8, %p1890_p3  ;;  %s1442_s23 = scalar_lea.vmem %s1441_s21, 512 }
  0x5c   : > { %428 = vmatpush1.bf16.msra.mxu0 %v1348_v10  ;;  %1201 = vmatprep.subr.bf16.mxu1 %v1541_v19  ;;  %p1443_p10 = scmp.lt.s32.totalorder %s1798_s12, %s1441_s21  ;;  %p1444_p2 = scmp.lt.s32.totalorder %s1442_s23, %s1436_s5 }
  0x5d   : > { %429 = vmatprep.subr.bf16.mxu0 %v1349_v11  ;;  %p1439_p7 = pneg %p1438_p11 }
  0x5e   : > { %p1445_p13 = por %p1444_p2, %p1443_p10 }
  0x5f   : > { %1202 = vmatpush3.bf16.msra.mxu1 %v1361_v39 }
  0x60   : > { %430 = vmatpush1.bf16.msra.mxu0 %v1351_v12  ;;  %1203 = vmatprep.subr.bf16.mxu1 %v1541_v19  ;;  %p1446_p0 = pnand %p1445_p13, %p1439_p7 }
  0x61   : > { %431 = vmatprep.subr.bf16.mxu0 %v1352_v13 }
  0x63   : > { %1204 = vmatpush3.bf16.msra.mxu1 %v1362_v40 }
  0x64   : > { %432 = vmatpush1.bf16.msra.mxu0 %v1354_v14  ;;  %1205 = vmatprep.subr.bf16.mxu1 %v1541_v19 }
  0x65   : > { %433 = vmatprep.subr.bf16.mxu0 %v1355_v15 }
  0x67   : > { %1206 = vmatpush3.bf16.msra.mxu1 %v1363_v41 }
  0x68   : > { %434 = vmatpush1.bf16.msra.mxu0 %v1357_v16  ;;  %1207 = vmatprep.subr.bf16.mxu1 %v1541_v19 }
  0x69   : > { %1215 = vmatprep.subr.bf16.mxu0 %v1541_v19 }
  0x6b   : > { %452 = vmatmul.mubr.bf16.vlgmr.msra.gmra.mxu0 %v241_v18  ;;  %1208 = vmatpush3.bf16.msra.mxu1 %v1364_v42 }
  0x6c   : > { %1217 = vmatprep.mubr.msk.bf16.mxu0 %vm1542_vm0, %v1541_v19  ;;  %1209 = vmatprep.subr.bf16.mxu1 %v1541_v19 }
  0x6f   : > { %1210 = vmatpush3.bf16.msra.mxu1 %v1365_v43 }
  0x70   : > { %1221 = vmatprep.subr.bf16.mxu1 %v1541_v19 }
  0x72   : > { %1212 = vmatmul.mubr.bf16.vlgmr.msra.gmra.mxu1 %v241_v18 }
  0x73   : > { %1223 = vmatprep.mubr.msk.bf16.mxu1 %vm1542_vm0, %v1541_v19 }
 0x12b   : > { %v453_v26 = vpop.f32.mrf.mxu0 }
 0x12c   : > { %v454_v31 = vadd.f32 %v453_v26, %v279_v27 }
 0x12d   : > { %v455_v28 = vpop.f32.mrf.mxu0 }
 0x12e   : > { %v456_v29 = vadd.f32 %v455_v28, %v283_v25  ;;  %v500_v35 = vpack.c.bf16 %v454_v31, %v454_v31 }
 0x12f   : > { %v457_v30 = vpop.f32.mrf.mxu0 }
 0x130   : > { %v501_v32 = vpack.c.bf16 %v456_v29, %v456_v29 }
 0x131   : > { %v458_v33 = vpop.f32.mrf.mxu0 }
 0x132   : > { %729 = vrot.lane.b32.xlu1 %v501_v32, %s1543_s24  ;;  %616 = vrot.lane.b32.xlu0 %v501_v32, %s1544_s26  ;;  %v508_v34 = vsel %vm503_vm1, %v501_v32, 0  ;;  %v494_v60 = vpop.f32.mrf.mxu1 }
 0x133   : > { %1216 = vmatpush3.bf16.xpose.msra.mxu0 %v508_v34  ;;  %v495_v61 = vadd.f32 %v494_v60, %v287_v59 }
 0x134   : > { %1227 = vmatprep.subr.bf16.mxu0 %v1541_v19  ;;  %v1213_v62 = vpop.f32.mrf.mxu1 }
 0x135   : > { %v502_v63 = vpack.c.bf16 %v495_v61, %v495_v61 }
 0x136   : > { %727 = vrot.lane.b32.xlu1 %v500_v35, %s1543_s24  ;;  %613 = vrot.lane.b32.xlu0 %v500_v35, %s1544_s26  ;;  %v497_v0 = vpop.f32.mrf.mxu1 }
 0x137   : > { %v570_v1 = vsel %vm568_vm3, %v502_v63, 0 }
 0x138   : > { %v1214_v2 = vpop.f32.mrf.mxu1  ;;  %1222 = vmatpush3.bf16.msra.mxu1 %v570_v1 }
 0x139   : > { %1233 = vmatprep.subr.bf16.mxu1 %v1541_v19 }
 0x13a   : > { %839 = vrot.lane.b32.xlu1 %v500_v35, %s1545_s28  ;;  %841 = vrot.lane.b32.xlu0 %v501_v32, %s1545_s28 }
 0x13b   : > { %1218 = vmatmul.mubr.msk.bf16.vlgmr.msra.gmra.mxu0 %vm503_vm1, %v500_v35 }
 0x13c   : > { %1229 = vmatprep.mubr.msk.bf16.mxu0 %vm1542_vm0, %v1541_v19 }
 0x1a4   : > { %v617_v44 = vpop.permute.xlu0 %616  ;;  %v730_v46 = vpop.permute.xlu1 %729 }
 0x1a5   : > { %v622_v45 = vsel %vm503_vm1, %v617_v44, 0  ;;  %v735_v48 = vsel %vm503_vm1, %v730_v46, 0 }
 0x1a6   : > { %1228 = vmatpush3.bf16.xpose.msra.mxu0 %v622_v45 }
 0x1a7   : > { %1239 = vmatprep.subr.bf16.mxu0 %v1541_v19 }
 0x1a8   : > { %v614_v47 = vpop.permute.xlu0 %613  ;;  %v728_v50 = vpop.permute.xlu1 %727 }
 0x1ac   : > { %v842_v49 = vpop.permute.xlu0 %841  ;;  %v840_v52 = vpop.permute.xlu1 %839 }
 0x1ad   : > { %1230 = vmatmul.mubr.msk.bf16.vlgmr.msra.gmra.mxu0 %vm503_vm1, %v614_v47  ;;  %v847_v51 = vsel %vm503_vm1, %v842_v49, 0 }
 0x1ae   : > { %1240 = vmatpush3.bf16.xpose.msra.mxu0 %v735_v48  ;;  %1241 = vmatprep.mubr.msk.bf16.mxu0 %vm1542_vm0, %v1541_v19 }
 0x1af   : > { %1251 = vmatprep.subr.bf16.mxu0 %v1541_v19 }
 0x1b5   : > { %1242 = vmatmul.mubr.msk.bf16.vlgmr.msra.gmra.mxu0 %vm503_vm1, %v728_v50 }
 0x1b6   : > { %1252 = vmatpush3.bf16.xpose.msra.mxu0 %v847_v51  ;;  %1253 = vmatprep.mubr.msk.bf16.mxu0 %vm1542_vm0, %v1541_v19 }
 0x1bd   : > { %1254 = vmatmul.mubr.msk.bf16.vlgmr.msra.gmra.mxu0 %vm503_vm1, %v840_v52 }
 0x1fb   : > { %v544_v53 = vpop.f32.mrf.mxu0 }
 0x1fc   : > { %v551_v54 = vsel %vm550_vm2, %v544_v53, -inf }
 0x1fd   : > { %552 = vmax.xlane.f32.xlu0 %v551_v54  ;;  %v1219_v55 = vpop.f32.mrf.mxu0 }
 0x1ff   : > { %v547_v56 = vpop.f32.mrf.mxu0 }
 0x201   : > { %v1220_v57 = vpop.f32.mrf.mxu0 }
 0x26d   : > { %v658_v3 = vpop.f32.mrf.mxu0 }
 0x26e   : > { %v664_v4 = vsel %vm550_vm2, %v658_v3, -inf }
 0x26f   : > { %665 = vmax.xlane.f32.xlu1 %v664_v4  ;;  %v1231_v5 = vpop.f32.mrf.mxu0 }
 0x271   : > { %v661_v6 = vpop.f32.mrf.mxu0 }
 0x273   : > { %v1232_v7 = vpop.f32.mrf.mxu0 }
 0x275   : > { %v771_v8 = vpop.f32.mrf.mxu0 }
 0x276   : > { %v777_v9 = vsel %vm550_vm2, %v771_v8, -inf }
 0x277   : > { %778 = vmax.xlane.f32.xlu0 %v777_v9  ;;  %v1243_v10 = vpop.f32.mrf.mxu0 }
 0x279   : > { %v774_v11 = vpop.f32.mrf.mxu0 }
 0x27b   : > { %v1244_v12 = vpop.f32.mrf.mxu0 }
 0x27d   : > { %v883_v13 = vpop.f32.mrf.mxu0 }
 0x27e   : > { %v889_v14 = vsel %vm550_vm2, %v883_v13, -inf }
 0x27f   : > { %890 = vmax.xlane.f32.xlu0 %v889_v14  ;;  %v1255_v15 = vpop.f32.mrf.mxu0 }
 0x281   : > { %v886_v16 = vpop.f32.mrf.mxu0 }
 0x283   : > { %v1256_v17 = vpop.f32.mrf.mxu0 }
 0x286   : > { %v553_v18 = vpop.xlane.xlu0 %552 }
 0x287   : > { %v554_v20 = vsub.f32 %v544_v53, %v553_v18 }
 0x289   : > { %v555_v21 = vmul.f32 1.442695, %v554_v20 }
 0x28b   : > { %1366 = vpow2.f32 %v555_v21 }
 0x298   : > { %v1367_v22 = vpop.eup %1366 }
 0x299   : > { %v557_v23 = vsel %vm550_vm2, %v1367_v22, 0.0 }
 0x29a   : > { %558 = vadd.xlane.f32.xlu1 %v557_v23 }
 0x2ab   : > { %679 = vrot.lane.b32.xlu1 %v502_v63, %s1544_s26 }
 0x2f8   : > { %v666_v24 = vpop.xlane.xlu1 %665 }
 0x2f9   : > { %v667_v25 = vsub.f32 %v658_v3, %v666_v24 }
 0x2fb   : > { %v668_v26 = vmul.f32 1.442695, %v667_v25 }
 0x2fd   : > { %1368 = vpow2.f32 %v668_v26 }
 0x300   : > { %v779_v27 = vpop.xlane.xlu0 %778 }
 0x301   : > { %v780_v28 = vsub.f32 %v771_v8, %v779_v27 }
 0x303   : > { %v781_v29 = vmul.f32 1.442695, %v780_v28 }
 0x305   : > { %1370 = vpow2.f32 %v781_v29 }
 0x308   : > { %v891_v30 = vpop.xlane.xlu0 %890 }
 0x309   : > { %v892_v31 = vsub.f32 %v883_v13, %v891_v30 }
 0x30a   : > { %v1369_v32 = vpop.eup %1368 }
 0x30b   : > { %v893_v33 = vmul.f32 1.442695, %v892_v31  ;;  %v670_v34 = vsel %vm550_vm2, %v1369_v32, 0.0 }
 0x30c   : > { %671 = vadd.xlane.f32.xlu0 %v670_v34 }
 0x30d   : > { %1372 = vpow2.f32 %v893_v33 }
 0x312   : > { %v1371_v35 = vpop.eup %1370 }
 0x313   : > { %v783_v36 = vsel %vm550_vm2, %v1371_v35, 0.0 }
 0x314   : > { %784 = vadd.xlane.f32.xlu1 %v783_v36 }
 0x31a   : > { %v1373_v37 = vpop.eup %1372 }
 0x31b   : > { %v895_v38 = vsel %vm550_vm2, %v1373_v37, 0.0 }
 0x31c   : > { %896 = vadd.xlane.f32.xlu0 %v895_v38 }
 0x323   : > { %v559_v39 = vpop.xlane.xlu1 %558 }
 0x324   : > { %1374 = vrcp.f32 %v559_v39 }
 0x325   : > { %903 = vrot.lane.b32.xlu1 %v502_v63, %s1545_s28 }
 0x327   : > { %v680_v41 = vpop.permute.xlu1 %679 }
 0x328   : > { %v685_v44 = vsel %vm568_vm3, %v680_v41, 0 }
 0x331   : > { %v1375_v40 = vpop.eup %1374 }
 0x332   : > { %791 = vrot.lane.b32.xlu0 %v502_v63, %s1543_s24  ;;  %v561_v42 = vmul.f32 %v1375_v40, %v1367_v22 }
 0x334   : > { %v562_v43 = vpack.c.bf16 %v561_v42, %v561_v42 }
 0x336   : > { %564 = vst.msk [vmem:[%s1765_s7] sm:$0xf] %vm563_vm4, %v562_v43  ;;  %1224 = vmatmul.mubr.msk.bf16.vlgmr.msra.gmra.mxu1 %vm550_vm2, %v562_v43 }
 0x337   : > { %1234 = vmatpush3.bf16.msra.mxu1 %v685_v44  ;;  %1235 = vmatprep.mubr.msk.bf16.mxu1 %vm1542_vm0, %v1541_v19 }
 0x338   : > { %1245 = vmatprep.subr.bf16.mxu1 %v1541_v19 }
 0x395   : > { %v672_v45 = vpop.xlane.xlu0 %671 }
 0x396   : > { %1376 = vrcp.f32 %v672_v45 }
 0x39d   : > { %v785_v46 = vpop.xlane.xlu1 %784 }
 0x39e   : > { %1378 = vrcp.f32 %v785_v46 }
 0x3a1   : > { %v904_v55 = vpop.permute.xlu1 %903 }
 0x3a2   : > { %v909_v57 = vsel %vm568_vm3, %v904_v55, 0 }
 0x3a3   : > { %v1377_v47 = vpop.eup %1376 }
 0x3a4   : > { %v674_v48 = vmul.f32 %v1377_v47, %v1369_v32 }
 0x3a5   : > { %v897_v49 = vpop.xlane.xlu0 %896 }
 0x3a6   : > { %1380 = vrcp.f32 %v897_v49  ;;  %v675_v50 = vpack.c.bf16 %v674_v48, %v674_v48 }
 0x3a8   : > { %1154 = vst.msk [vmem:[%s1765_s7 + $0x4] sm:$0xf] %vm563_vm4, %v675_v50  ;;  %1236 = vmatmul.mubr.msk.bf16.vlgmr.msra.gmra.mxu1 %vm550_vm2, %v675_v50 }
 0x3a9   : > { %v792_v51 = vpop.permute.xlu0 %791  ;;  %1247 = vmatprep.mubr.msk.bf16.mxu1 %vm1542_vm0, %v1541_v19 }
 0x3aa   : > { %v797_v52 = vsel %vm568_vm3, %v792_v51, 0 }
 0x3ab   : > { %v1379_v53 = vpop.eup %1378  ;;  %1246 = vmatpush3.bf16.msra.mxu1 %v797_v52 }
 0x3ac   : > { %1257 = vmatprep.subr.bf16.mxu1 %v1541_v19  ;;  %v787_v54 = vmul.f32 %v1379_v53, %v1371_v35 }
 0x3ae   : > { %v788_v56 = vpack.c.bf16 %v787_v54, %v787_v54 }
 0x3b0   : > { %1157 = vst.msk [vmem:[%s1765_s7 + $0x8] sm:$0xf] %vm563_vm4, %v788_v56  ;;  %1248 = vmatmul.mubr.msk.bf16.vlgmr.msra.gmra.mxu1 %vm550_vm2, %v788_v56 }
 0x3b1   : > { %1258 = vmatpush3.bf16.msra.mxu1 %v909_v57  ;;  %1259 = vmatprep.mubr.msk.bf16.mxu1 %vm1542_vm0, %v1541_v19 }
 0x3b3   : > { %v1381_v58 = vpop.eup %1380 }
 0x3b4   : > { %v899_v59 = vmul.f32 %v1381_v58, %v1373_v37 }
 0x3b6   : > { %v900_v60 = vpack.c.bf16 %v899_v59, %v899_v59 }
 0x3b8   : > { %1160 = vst.msk [vmem:[%s1765_s7 + $0xc] sm:$0xf] %vm563_vm4, %v900_v60  ;;  %1260 = vmatmul.mubr.msk.bf16.vlgmr.msra.gmra.mxu1 %vm550_vm2, %v900_v60 }
 0x3f6   : > { %v606_v61 = vpop.f32.mrf.mxu1 }
 0x3f8   : > { %v1225_v62 = vpop.f32.mrf.mxu1 }
 0x3fa   : > { %v609_v63 = vpop.f32.mrf.mxu1 }
 0x3fc   : > { %v1226_v0 = vpop.f32.mrf.mxu1 }
 0x468   : > { %v721_v1 = vpop.f32.mrf.mxu1 }
 0x469   : > { %952 = vrot.lane.b32.xlu1 %v721_v1, %s1545_s28 }
 0x46a   : > { %v1237_v2 = vpop.f32.mrf.mxu1 }
 0x46c   : > { %v724_v19 = vpop.f32.mrf.mxu1 }
 0x46e   : > { %v1238_v3 = vpop.f32.mrf.mxu1 }
 0x470   : > { %v833_v4 = vpop.f32.mrf.mxu1 }
 0x471   : > { %956 = vrot.lane.b32.xlu0 %v833_v4, %s1543_s24 }
 0x472   : > { %v1249_v5 = vpop.f32.mrf.mxu1 }
 0x473   : > { %1449 = shalt.err (!%p1446_p0)
}
 0x474   : > { %s1450_s28 = scalar_lea.hbm %s1796_s14, 256  ;;  %s1454_s8 = scalar_lea.hbm %s1874_s4, 512 }
 0x475   : > { %p1451_p5 = scmp.ne.s32.totalorder %s1796_s14, %s1450_s28  ;;  %p1455_p1 = scmp.lt.s32.totalorder %s1796_s14, %s1874_s4 }
 0x476   : > { %p1456_p4 = scmp.lt.s32.totalorder %s1454_s8, %s1450_s28 }
 0x477   : > { %p1452_p9 = pnand %p1451_p5, %p1890_p3 }
 0x478   : > { %p1457_p6 = por %p1456_p4, %p1455_p1 }
 0x479   : > { %p1453_p12 = pneg %p1452_p9 }
 0x47b   : > { %p1458_p8 = pnand %p1457_p6, %p1453_p12 }
 0x47d   : > { %1461 = shalt.err (!%p1458_p8)
}
 0x47e   : > { %s1547_s5 = smov 4   ;;  %v836_v6 = vpop.f32.mrf.mxu1  ;;  %vm964_vm5 = vcmask 523264   ;;  %s1164_s6 = sshll.u32 %s1595_s19, 7  ;;  %vm966_vm6 = vcmask 785408  }
 0x47f   : > { %1270 = dma.vmem_to_hbm [thread:$0]  (%p1890_p3), %s1798_s12, 256, %s1796_s14, %s975_s20, %s1543_s24, %s1543_s24, %s1547_s5  }
 0x480   : > { %v1250_v7 = vpop.f32.mrf.mxu1  ;;  %s231_s21 = scalar_lea.vmem [#allocation7], %s1123_s30  ;;  %s970_s14 = scalar_lea.sflag [#allocation4], %s1681_s25 }
 0x481   : > { %s988_s23 = sshll.u32 %s231_s21, 4  ;;  %s1548_s19 = smov [#allocation7]   ;;  %s989_s23 = int_to_ptr.vmem [resolvable:$true] %s988_s23 }
 0x482   : > { %v945_v8 = vpop.f32.mrf.mxu1  ;;  %s1462_s20 = scalar_lea.vmem %s989_s23, 128  ;;  %s1466_s30 = sshll.u32 %s1548_s19, 4  ;;  %s1467_s30 = int_to_ptr.vmem [resolvable:$false] %s1466_s30 }
 0x483   : > { %960 = vrot.lane.b32.xlu1 %v945_v8, %s1544_s26  ;;  %s1833_s26 = scalar_lea.hbm %s1873_s3, %s1164_s6  ;;  %p1463_p11 = scmp.ne.s32.totalorder %s989_s23, %s1462_s20 }
 0x484   : > { %v1261_v9 = vpop.f32.mrf.mxu1  ;;  %s1468_s28 = scalar_lea.vmem %s1467_s30, 256  ;;  %p1469_p2 = scmp.lt.s32.totalorder %s989_s23, %s1467_s30 }
 0x485   : > { %p1464_p7 = pnand %p1463_p11, %p1890_p3  ;;  %p1470_p13 = scmp.lt.s32.totalorder %s1468_s28, %s1462_s20 }
 0x486   : > { %v948_v10 = vpop.f32.mrf.mxu1 }
 0x487   : > { %p1465_p10 = pneg %p1464_p7  ;;  %p1471_p0 = por %p1470_p13, %p1469_p2 }
 0x488   : > { %v1262_v11 = vpop.f32.mrf.mxu1 }
 0x489   : > { %p1472_p5 = pnand %p1471_p0, %p1465_p10 }
 0x4db   : > { %v953_v12 = vpop.permute.xlu1 %952 }
 0x4dc   : > { %v963_v14 = vsel %vm503_vm1, %v606_v61, %v953_v12 }
 0x4e3   : > { %v957_v13 = vpop.permute.xlu0 %956 }
 0x4e4   : > { %v965_v15 = vsel %vm964_vm5, %v963_v14, %v957_v13 }
 0x4f5   : > { %v961_v16 = vpop.permute.xlu1 %960 }
 0x4f6   : > { %v967_v17 = vsel %vm966_vm6, %v965_v15, %v961_v16 }
 0x4f7   : > { %968 = vst [vmem:[%s231_s21] sm:$0xff] %v967_v17 }
 0x4f8   : > { %1475 = shalt.err (!%p1472_p5)
}
 0x4f9   : > { %s1476_s29 = scalar_lea.hbm %s1833_s26, 128  ;;  %s1480_s8 = scalar_lea.hbm %s1873_s3, 256 }
 0x4fa   : > { %p1477_p9 = scmp.ne.s32.totalorder %s1833_s26, %s1476_s29  ;;  %p1481_p4 = scmp.lt.s32.totalorder %s1833_s26, %s1873_s3 }
 0x4fb   : > { %p1482_p6 = scmp.lt.s32.totalorder %s1480_s8, %s1476_s29 }
 0x4fc   : > { %p1478_p12 = pnand %p1477_p9, %p1890_p3 }
 0x4fd   : > { %p1483_p8 = por %p1482_p6, %p1481_p4 }
 0x4fe   : > { %p1479_p1 = pneg %p1478_p12 }
 0x500   : > { %p1484_p11 = pnand %p1483_p8, %p1479_p1 }
 0x502   : > { %1487 = shalt.err (!%p1484_p11)
}
 0x503   : > { %1269 = dma.vmem_to_hbm [thread:$0]  (%p1890_p3), %s989_s23, 128, %s1833_s26, %s970_s14  }
 0x504 PF: > { %s1016_s5 = sand.u32 1, %s1522_s15   ;;  %p1891_p7 = scmp.ne.s32.totalorder %s1880_s22, 0 }
 0x505   : > { %p1892_p10 = scmp.ge.s32.totalorder %s1534_s18, 2  ;;  %s1017_s6 = scalar_lea.sflag [#allocation4], %s1016_s5 }
 0x507   : > { %p1282_p2 = pnand %p1892_p10, %p1891_p7 }
 0x509   : > { %p1283_p13 = pneg %p1282_p2 }
 0x50b   : > { %1513 = dma.done.wait (%p1283_p13), %s1017_s6, 128  }
 0x50c   : > { %1515 = vsyncadd (%p1283_p13), %s1017_s6, 4294967168  ;;  %s1026_s21 = scalar_lea.sflag [#allocation9], %s1016_s5 }
 0x50d   : > { %1517 = dma.done.wait (%p1283_p13), %s1026_s21, 256  }
 0x50e   : > { %1519 = vsyncadd (%p1283_p13), %s1026_s21, 4294967040  ;;  %p22_p3 = scmp.ge.s32.totalorder %s1628_s27, 4   ;;  %s1893_s15 = smov %s1526_s16 }
 0x50f   : > { %s1894_s16 = smov %s1530_s17  ;;  %s1895_s17 = smov %s1645_s9 }
 0x510   : > { %s1896_s18 = smov %s1628_s27  ;;  %24 = sbr.rel (!%p22_p3) target bundleno = 8 (0x8), region = 101 }
 0x515   :  { %1031 = vsyncpa [#allocation3], 1 }
 0x516   :  { %1033 = vsyncpa [#allocation3 + $0x1], 1 }
 0x517   :  { %1034 = vsyncpa [#allocation6], 1 }
 0x518   :  { %1035 = vsyncpa [#allocation4], 1 }
 0x519   :  { %1037 = vsyncpa [#allocation4 + $0x1], 1 }
 0x51a   :  { %1038 = vsyncpa [#allocation9], 1 }
 0x51b   :  { %1040 = vsyncpa [#allocation9 + $0x1], 1 }

</bundles_post_ra>
